<compile_context>
chip_gen: v5e
topology: v5e:2x2
jax: 0.10.0
libtpu: 0.0.40
codegen_flags: <defaults>
</compile_context>

<pallas_src>
import jax
import jax.numpy as jnp
from jax import lax
from jax.experimental import pallas as pl
from jax.experimental.pallas import tpu as pltpu

INPUT_SIZE = 10
HIDDEN_SIZE = 20
OUTPUT_SIZE = 2


def _round_up(n, m):
    return ((n + m - 1) // m) * m


def _mlp_kernel(x_ref, w1t_ref, b1_ref, w2_ref, b2_ref, oT_ref):
    # x: (tb, IN)  w1t: (IN, HID)  b1: (1, HID)  w2: (OUT, HID)  b2: (OUT, 1)
    x = x_ref[...]
    h = jnp.dot(x, w1t_ref[...], preferred_element_type=jnp.float32)   # (tb, HID)
    h = jnp.maximum(h + b1_ref[...], 0.0)                              # bias + ReLU (f32)
    # Contract HID of both operands -> (OUT, tb): output stays lane-dense.
    yT = lax.dot_general(w2_ref[...], h, (((1,), (1,)), ((), ())),
                         preferred_element_type=jnp.float32)
    oT_ref[...] = (yT + b2_ref[...]).astype(oT_ref.dtype)


def simple_net_forward(x, w1, b1, w2, b2, *, block_b=16384, return_transposed=False):
    """x: (B, INPUT_SIZE). Params in PyTorch nn.Linear layout:
    w1 (HIDDEN, INPUT), b1 (HIDDEN,), w2 (OUTPUT, HIDDEN), b2 (OUTPUT,).
    Returns (B, OUTPUT_SIZE) f32, or (OUTPUT_SIZE, B) if return_transposed."""
    B = int(x.shape[0])

    # Tile selection: lane-aligned, >=2 grid steps when the batch allows (v7x
    # megacore), padding waste bounded by 128 rows per step.
    min_steps = 2 if B > 128 else 1
    n_steps = max(pl.cdiv(B, block_b), min_steps)
    tb = _round_up(pl.cdiv(B, n_steps), 128)
    n_steps = pl.cdiv(B, tb)
    b_out = n_steps * tb                      # output padded to whole tiles (sliced below)

    # Tiny parameter plumbing (a few hundred bytes) -- NOT a pass over x.
    xf = x.astype(jnp.float32)
    w1t = jnp.asarray(w1, jnp.float32).T                       # (IN, HID)
    b1r = jnp.asarray(b1, jnp.float32).reshape(1, HIDDEN_SIZE)
    w2f = jnp.asarray(w2, jnp.float32)                         # (OUT, HID)
    b2r = jnp.asarray(b2, jnp.float32).reshape(OUTPUT_SIZE, 1)

    # VMEM estimate: x tile (tb,10) pads its lane dim to 128 -> 512*tb B per buffer
    # (double-buffered); h temp ~512*tb; out tile (2,tb) pads sublanes to 8.
    est = 2 * (tb * 128 * 4) + (tb * 128 * 4) + 2 * (8 * tb * 4) + (1 << 20)
    vmem_limit = int(min(max(32 << 20, est + est // 2), 100 << 20))

    cost = pl.CostEstimate(
        flops=2 * B * (INPUT_SIZE * HIDDEN_SIZE + HIDDEN_SIZE * OUTPUT_SIZE),
        transcendentals=0,
        bytes_accessed=B * INPUT_SIZE * 4 + B * OUTPUT_SIZE * 4
        + (w1t.size + b1r.size + w2f.size + b2r.size) * 4,
    )

    yT = pl.pallas_call(
        _mlp_kernel,
        out_shape=jax.ShapeDtypeStruct((OUTPUT_SIZE, b_out), jnp.float32),
        grid_spec=pl.GridSpec(
            grid=(n_steps,),
            in_specs=[
                pl.BlockSpec((tb, INPUT_SIZE), lambda i: (i, 0)),           # x: streamed, native layout
                pl.BlockSpec((INPUT_SIZE, HIDDEN_SIZE), lambda i: (0, 0)),  # params: VMEM-resident
                pl.BlockSpec((1, HIDDEN_SIZE), lambda i: (0, 0)),
                pl.BlockSpec((OUTPUT_SIZE, HIDDEN_SIZE), lambda i: (0, 0)),
                pl.BlockSpec((OUTPUT_SIZE, 1), lambda i: (0, 0)),
            ],
            out_specs=pl.BlockSpec((OUTPUT_SIZE, tb), lambda i: (0, i)),    # lane-dense store
        ),
        compiler_params=pltpu.CompilerParams(
            dimension_semantics=("parallel",),
            vmem_limit_bytes=vmem_limit,
        ),
        cost_estimate=cost,
    )(xf, w1t, b1r, w2f, b2r)

    if return_transposed:
        return yT[:, :B]
    return yT[:, :B].T


if __name__ == "__main__":
    key = jax.random.PRNGKey(0)
    kx, k1, kb1, k2, kb2 = jax.random.split(key, 5)

    # Small-integer-valued data: every product / partial sum is exactly
    # representable in bf16 and f32, so kernel-vs-reference comparison is exact
    # regardless of which f32 matmul pass count the MXU uses.
    w1 = jax.random.randint(k1, (HIDDEN_SIZE, INPUT_SIZE), -2, 3).astype(jnp.float32)
    b1 = jax.random.randint(kb1, (HIDDEN_SIZE,), -2, 3).astype(jnp.float32)
    w2 = jax.random.randint(k2, (OUTPUT_SIZE, HIDDEN_SIZE), -2, 3).astype(jnp.float32)
    b2 = jax.random.randint(kb2, (OUTPUT_SIZE,), -2, 3).astype(jnp.float32)

    # Cover: single partial block, multi-step grid with masked tail, aligned multi-step.
    for batch in (8, 200, 384):
        x = jax.random.randint(jax.random.fold_in(kx, batch),
                               (batch, INPUT_SIZE), -3, 4).astype(jnp.float32)
        out = jax.block_until_ready(simple_net_forward(x, w1, b1, w2, b2))
        ref = jnp.maximum(x @ w1.T + b1, 0.0) @ w2.T + b2
        assert out.shape == (batch, OUTPUT_SIZE)
        err = float(jnp.max(jnp.abs(out - ref)))
        assert err < 1e-5, f"batch={batch} max|err|={err}"

    print("KERNEL_OK")
</pallas_src>

<mosaic_0001>
module attributes {stable_mosaic.version = 11 : i64} {
  func.func @_mlp_kernel(%arg0: i32, %arg1: memref<128x10xf32, #tpu.memory_space<vmem>>, %arg2: memref<10x20xf32, #tpu.memory_space<vmem>>, %arg3: memref<1x20xf32, #tpu.memory_space<vmem>>, %arg4: memref<2x20xf32, #tpu.memory_space<vmem>>, %arg5: memref<2x1xf32, #tpu.memory_space<vmem>>, %arg6: memref<2x128xf32, #tpu.memory_space<vmem>>) attributes {dimension_semantics = [#tpu.dimension_semantics<parallel>], iteration_bounds = array<i64: 1>, scalar_prefetch = 0 : i64, scratch_operands = 0 : i64, tpu.core_type = #tpu.core_type<tc>, window_params = [{transform_indices = @transform_0, window_bounds = array<i64: 128, 10>}, {pipeline_mode = #tpu.pipeline_mode<synchronous>, transform_indices = @transform_1, window_bounds = array<i64: 10, 20>}, {pipeline_mode = #tpu.pipeline_mode<synchronous>, transform_indices = @transform_2, window_bounds = array<i64: 1, 20>}, {pipeline_mode = #tpu.pipeline_mode<synchronous>, transform_indices = @transform_3, window_bounds = array<i64: 2, 20>}, {pipeline_mode = #tpu.pipeline_mode<synchronous>, transform_indices = @transform_4, window_bounds = array<i64: 2, 1>}, {transform_indices = @transform_5, window_bounds = array<i64: 2, 128>}]} {
    %c0 = arith.constant 0 : index
    %c0_0 = arith.constant 0 : index
    %0 = vector.load %arg1[%c0, %c0_0] : memref<128x10xf32, #tpu.memory_space<vmem>>, vector<128x10xf32>
    %c0_1 = arith.constant 0 : index
    %c0_2 = arith.constant 0 : index
    %1 = vector.load %arg2[%c0_1, %c0_2] : memref<10x20xf32, #tpu.memory_space<vmem>>, vector<10x20xf32>
    %cst = arith.constant dense<0.000000e+00> : vector<128x20xf32>
    %2 = tpu.matmul %0, %1, %cst {dimension_numbers = #tpu.dot_dimension_numbers<[1], [0], [0], [1], [0, 0, 1, 1], [], []>} : vector<128x10xf32>, vector<10x20xf32>, vector<128x20xf32> -> vector<128x20xf32>
    %c0_3 = arith.constant 0 : index
    %c0_4 = arith.constant 0 : index
    %3 = vector.load %arg3[%c0_3, %c0_4] : memref<1x20xf32, #tpu.memory_space<vmem>>, vector<1x20xf32>
    %4 = vector.broadcast %3 : vector<1x20xf32> to vector<128x20xf32>
    %5 = arith.addf %2, %4 : vector<128x20xf32>
    %cst_5 = arith.constant 0.000000e+00 : f32
    %6 = vector.broadcast %cst_5 : f32 to vector<128x20xf32>
    %7 = arith.maximumf %5, %6 : vector<128x20xf32>
    %c0_6 = arith.constant 0 : index
    %c0_7 = arith.constant 0 : index
    %8 = vector.load %arg4[%c0_6, %c0_7] : memref<2x20xf32, #tpu.memory_space<vmem>>, vector<2x20xf32>
    %cst_8 = arith.constant dense<0.000000e+00> : vector<2x128xf32>
    %9 = tpu.matmul %8, %7, %cst_8 {dimension_numbers = #tpu.dot_dimension_numbers<[1], [1], [0], [0], [0, 0, 1, 0], [], []>} : vector<2x20xf32>, vector<128x20xf32>, vector<2x128xf32> -> vector<2x128xf32>
    %c0_9 = arith.constant 0 : index
    %c0_10 = arith.constant 0 : index
    %10 = vector.load %arg5[%c0_9, %c0_10] : memref<2x1xf32, #tpu.memory_space<vmem>>, vector<2x1xf32>
    %11 = vector.broadcast %10 : vector<2x1xf32> to vector<2x128xf32>
    %12 = arith.addf %9, %11 : vector<2x128xf32>
    %c0_11 = arith.constant 0 : index
    %c0_12 = arith.constant 0 : index
    %13 = vector.load %arg6[%c0_11, %c0_12] : memref<2x128xf32, #tpu.memory_space<vmem>>, vector<2x128xf32>
    tpu.vector_store %arg6[%c0_11, %c0_12], %12 {strides = array<i32>} : memref<2x128xf32, #tpu.memory_space<vmem>>, vector<2x128xf32>,
    return
  }
  func.func @transform_0(%arg0: i32) -> (i32, i32) {
    %c0_i32 = arith.constant 0 : i32
    %c0_i32_0 = arith.constant 0 : i32
    return %arg0, %c0_i32 : i32, i32
  }
  func.func @transform_1(%arg0: i32) -> (i32, i32) {
    %c0_i32 = arith.constant 0 : i32
    %c0_i32_0 = arith.constant 0 : i32
    %c0_i32_1 = arith.constant 0 : i32
    return %c0_i32, %c0_i32_0 : i32, i32
  }
  func.func @transform_2(%arg0: i32) -> (i32, i32) {
    %c0_i32 = arith.constant 0 : i32
    %c0_i32_0 = arith.constant 0 : i32
    %c0_i32_1 = arith.constant 0 : i32
    return %c0_i32, %c0_i32_0 : i32, i32
  }
  func.func @transform_3(%arg0: i32) -> (i32, i32) {
    %c0_i32 = arith.constant 0 : i32
    %c0_i32_0 = arith.constant 0 : i32
    %c0_i32_1 = arith.constant 0 : i32
    return %c0_i32, %c0_i32_0 : i32, i32
  }
  func.func @transform_4(%arg0: i32) -> (i32, i32) {
    %c0_i32 = arith.constant 0 : i32
    %c0_i32_0 = arith.constant 0 : i32
    %c0_i32_1 = arith.constant 0 : i32
    return %c0_i32, %c0_i32_0 : i32, i32
  }
  func.func @transform_5(%arg0: i32) -> (i32, i32) {
    %c0_i32 = arith.constant 0 : i32
    %c0_i32_0 = arith.constant 0 : i32
    return %c0_i32, %arg0 : i32, i32
  }
}

</mosaic_0001>

<bundles_post_ra>
// kernel: tpu_custom_call.1
= control target key start
LH: loop header
LB: loop body
LE: loop exit
PB: predicated region body
PF: predicated region fallthrough
CT: control target
= control target key end

     0   :  { %10 = vsyncpa [#allocation3], 0  ;;  %s518_s0 = inlined_call_operand.hbm [shape: f32[8,10], index: 0, kind: input, shape index: {}]   ;;  %s519_s1 = inlined_call_operand.hbm [shape: f32[10,20], index: 1, kind: input, shape index: {}]   ;;  %s520_s2 = inlined_call_operand.vmem [shape: f32[1,20], index: 2, kind: input, shape index: {}]   ;;  %s521_s3 = inlined_call_operand.vmem [shape: f32[2,20], index: 3, kind: input, shape index: {}]   ;;  %s522_s4 = inlined_call_operand.vmem [shape: f32[2,1], index: 4, kind: input, shape index: {}]   ;;  %s523_s5 = inlined_call_operand.hbm [shape: f32[2,128], index: 5, kind: output, shape index: {}]  }
   0x1   :  { %11 = vsyncpa [#allocation6], 0 }
   0x2   :  { %12 = vsyncpa [#allocation4], 0 }
   0x3   :  { %16 = vsyncadd [#allocation3], 1920  ;;  %s17_s20 = sshll.u32 %s518_s0, 4  ;;  %s431_s21 = smov [#allocation2]   ;;  %s18_s20 = int_to_ptr.hbm [resolvable:$true] %s17_s20 }
   0x4   :  { %s19_s22 = sshll.u32 %s431_s21, 4  ;;  %s30_s25 = sshll.u32 %s519_s1, 4  ;;  %s20_s22 = int_to_ptr.vmem [resolvable:$true] %s19_s22  ;;  %s31_s25 = int_to_ptr.hbm [resolvable:$true] %s30_s25 }
   0x5   :  { %s432_s26 = smov 128   ;;  %s433_s27 = smov 8  }
   0x6   :  { %25 = dma.hbm_to_vmem [thread:$0]  %s18_s20, 128, %s20_s22, [#allocation3], %s432_s26, %s432_s26, %s433_s27  }
   0x7   :  { %s434_s28 = smov [#allocation5]  }
   0x8   :  { %s32_s29 = sshll.u32 %s434_s28, 4  ;;  %s33_s29 = int_to_ptr.vmem [resolvable:$true] %s32_s29 }
   0x9   :  { %38 = dma.hbm_to_vmem [thread:$0]  %s31_s25, 256, %s33_s29, [#allocation6], %s432_s26, %s432_s26, %s433_s27  }
   0xa   :  { %425 = dma.done.wait [#allocation3], 2048  }
   0xb   :  { %426 = vsyncadd [#allocation3], 4294965248 }
   0xc   :  { %427 = dma.done.wait [#allocation6], 256  }
   0xd   :  { %428 = vsyncadd [#allocation6], 4294967040  ;;  %vm124_vm0 = vcmask 1041408   ;;  %v70_v0 = vld [vmem:[#allocation5 + $0x8] sm:$0x3]  ;;  %v69_v1 = vld [vmem:[#allocation5] sm:$0xff] }
   0xe   :  { %341 = vmatpush.msk.msra.mxu2 %vm124_vm0, %v70_v0  ;;  %342 = vmatpush.msk.msra.mxu3 %vm124_vm0, %v70_v0  ;;  %v59_v2 = vld [vmem:[#allocation2 + $0x30] sm:$0xff]  ;;  %vm75_vm1 = vcmask 80896   ;;  %v66_v3 = vld [vmem:[#allocation2 + $0x68] sm:$0xff]  ;;  %v60_v4 = vld [vmem:[#allocation2 + $0x38] sm:$0xff]  ;;  %vm216_vm2 = vcmask 162816   ;;  %v435_v56 = vmov 0  }
   0xf   :  { %307 = vmatpush.msk.msra.mxu0 %vm124_vm0, %v70_v0  ;;  %v67_v5 = vld [vmem:[#allocation2 + $0x70] sm:$0xff]  ;;  %v53_v6 = vld [vmem:[#allocation2] sm:$0xff]  ;;  %v68_v8 = vld [vmem:[#allocation2 + $0x78] sm:$0xff]  ;;  %351 = vset.pattern.permute.xlu0 %v435_v56  ;;  %s436_s7 = smov [#allocation7]   ;;  %s296_s11 = sshll.u32 %s523_s5, 4  ;;  %s297_s11 = int_to_ptr.hbm [resolvable:$true] %s296_s11 }
  0x10   :  { %343 = vmatpush.msra.mxu2 %v69_v1  ;;  %344 = vmatpush.msra.mxu3 %v69_v1  ;;  %v61_v7 = vld [vmem:[#allocation2 + $0x40] sm:$0xff]  ;;  %v54_v9 = vld [vmem:[#allocation2 + $0x8] sm:$0xff]  ;;  %v55_v11 = vld [vmem:[#allocation2 + $0x10] sm:$0xff]  ;;  %s294_s8 = sshll.u32 %s436_s7, 4  ;;  %s295_s8 = int_to_ptr.vmem [resolvable:$true] %s294_s8 }
  0x11   :  { %314 = vmatmul.msk.f32.vlgmr.msra.gmra.mxu2 %vm75_vm1, %v59_v2  ;;  %321 = vmatmul.msk.f32.vlgmr.msra.gmra.mxu3 %vm75_vm1, %v66_v3  ;;  %v62_v10 = vld [vmem:[#allocation2 + $0x48] sm:$0xff]  ;;  %v63_v12 = vld [vmem:[#allocation2 + $0x50] sm:$0xff]  ;;  %v56_v13 = vld [vmem:[#allocation2 + $0x18] sm:$0xff] }
  0x12   :  { %143 = vmatpush.msra.mxu0 %v69_v1  ;;  %v64_v14 = vld [vmem:[#allocation2 + $0x58] sm:$0xff]  ;;  %v57_v15 = vld [vmem:[#allocation2 + $0x20] sm:$0xff]  ;;  %v58_v17 = vld [vmem:[#allocation2 + $0x28] sm:$0xff] }
  0x13   :  { %308 = vmatmul.msk.f32.vlgmr.msra.gmra.mxu0 %vm75_vm1, %v53_v6  ;;  %v65_v16 = vld [vmem:[#allocation2 + $0x60] sm:$0xff] }
  0x14   :  { %v352_v22 = vld [vmem:[%s520_s2] ss:$0 sm:$0xff] }
  0x15   :  { %v210_v54 = vld [vmem:[%s522_s4] sm:$0x3] }
  0x16   :  { %213 = vperm.xlu0 %351, %v210_v54  }
  0x19   :  { %315 = vmatmul.msk.f32.gmra.mxu2 %vm75_vm1, %v60_v4  ;;  %322 = vmatmul.msk.f32.gmra.mxu3 %vm75_vm1, %v67_v5  ;;  %v209_v5 = vld [vmem:[%s521_s3] sm:$0x3] }
  0x1b   :  { %309 = vmatmul.msk.f32.gmra.mxu0 %vm75_vm1, %v54_v9 }
  0x21   :  { %316 = vmatmul.msk.f32.gmra.mxu2 %vm75_vm1, %v61_v7  ;;  %323 = vmatmul.msk.f32.gmra.mxu3 %vm75_vm1, %v68_v8 }
  0x23   :  { %310 = vmatmul.msk.f32.gmra.mxu0 %vm75_vm1, %v55_v11 }
  0x29   :  { %317 = vmatmul.msk.f32.gmra.mxu2 %vm75_vm1, %v62_v10 }
  0x2b   :  { %311 = vmatmul.msk.f32.gmra.mxu0 %vm75_vm1, %v56_v13 }
  0x31   :  { %318 = vmatmul.msk.f32.gmra.mxu2 %vm75_vm1, %v63_v12 }
  0x33   :  { %312 = vmatmul.msk.f32.gmra.mxu0 %vm75_vm1, %v57_v15 }
  0x39   :  { %319 = vmatmul.msk.f32.gmra.mxu2 %vm75_vm1, %v64_v14 }
  0x3b   :  { %313 = vmatmul.msk.f32.gmra.mxu0 %vm75_vm1, %v58_v17 }
  0x41   :  { %320 = vmatmul.msk.f32.gmra.mxu2 %vm75_vm1, %v65_v16 }
  0x88   :  { %v214_v6 = vpop.permute.xlu0 %213 }
  0x90   :  { %v145_v28 = vpop.f32.mrf.mxu0 }
  0x91   :  { %v146_v2 = vadd.f32 %v352_v22, %v145_v28 }
  0x93   :  { %v193_v4 = vmax.f32 %v146_v2, 0.0 }
  0x94   :  { %v163_v18 = vpop.f32.mrf.mxu2  ;;  %v184_v19 = vpop.f32.mrf.mxu3 }
  0x95   :  { %v185_v30 = vadd.f32 %v352_v22, %v184_v19  ;;  %v164_v52 = vadd.f32 %v352_v22, %v163_v18 }
  0x97   :  { %v206_v32 = vmax.f32 %v185_v30, 0.0  ;;  %v199_v57 = vmax.f32 %v164_v52, 0.0 }
  0x98   :  { %v148_v33 = vpop.f32.mrf.mxu0 }
  0x99   :  { %v149_v0 = vadd.f32 %v352_v22, %v148_v33 }
  0x9b   :  { %v194_v3 = vmax.f32 %v149_v0, 0.0 }
  0x9c   :  { %v166_v20 = vpop.f32.mrf.mxu2  ;;  %v187_v21 = vpop.f32.mrf.mxu3 }
  0x9d   :  { %v188_v25 = vadd.f32 %v352_v22, %v187_v21  ;;  %v167_v49 = vadd.f32 %v352_v22, %v166_v20 }
  0x9f   :  { %v207_v29 = vmax.f32 %v188_v25, 0.0  ;;  %v200_v53 = vmax.f32 %v167_v49, 0.0 }
  0xa0   :  { %v151_v36 = vpop.f32.mrf.mxu0 }
  0xa1   :  { %v152_v62 = vadd.f32 %v352_v22, %v151_v36 }
  0xa3   :  { %v195_v1 = vmax.f32 %v152_v62, 0.0 }
  0xa4   :  { %v169_v23 = vpop.f32.mrf.mxu2  ;;  %v190_v24 = vpop.f32.mrf.mxu3 }
  0xa5   :  { %v191_v26 = vadd.f32 %v352_v22, %v190_v24  ;;  %v170_v47 = vadd.f32 %v352_v22, %v169_v23 }
  0xa7   :  { %v208_v27 = vmax.f32 %v191_v26, 0.0  ;;  %v201_v50 = vmax.f32 %v170_v47, 0.0 }
  0xa8   :  { %v154_v39 = vpop.f32.mrf.mxu0 }
  0xa9   :  { %324 = vmatpush.xpose.msk.msra.mxu1 %vm216_vm2, %v208_v27  ;;  %v155_v60 = vadd.f32 %v352_v22, %v154_v39 }
  0xab   :  { %v196_v63 = vmax.f32 %v155_v60, 0.0 }
  0xac   :  { %v172_v31 = vpop.f32.mrf.mxu2 }
  0xad   :  { %325 = vmatpush.xpose.msk.msra.mxu1 %vm216_vm2, %v207_v29  ;;  %v173_v44 = vadd.f32 %v352_v22, %v172_v31 }
  0xaf   :  { %v202_v48 = vmax.f32 %v173_v44, 0.0 }
  0xb0   :  { %v157_v46 = vpop.f32.mrf.mxu0 }
  0xb1   :  { %326 = vmatpush.xpose.msk.msra.mxu1 %vm216_vm2, %v206_v32  ;;  %v158_v59 = vadd.f32 %v352_v22, %v157_v46 }
  0xb3   :  { %v197_v61 = vmax.f32 %v158_v59, 0.0 }
  0xb4   :  { %v175_v34 = vpop.f32.mrf.mxu2 }
  0xb5   :  { %v176_v42 = vadd.f32 %v352_v22, %v175_v34 }
  0xb7   :  { %v203_v45 = vmax.f32 %v176_v42, 0.0 }
  0xb8   :  { %v160_v51 = vpop.f32.mrf.mxu0 }
  0xb9   :  { %v161_v55 = vadd.f32 %v352_v22, %v160_v51 }
  0xbb   :  { %v198_v58 = vmax.f32 %v161_v55, 0.0 }
  0xbc   :  { %v178_v35 = vpop.f32.mrf.mxu2 }
  0xbd   :  { %v179_v40 = vadd.f32 %v352_v22, %v178_v35 }
  0xbf   :  { %v204_v43 = vmax.f32 %v179_v40, 0.0 }
  0xc4   :  { %v181_v37 = vpop.f32.mrf.mxu2 }
  0xc5   :  { %v182_v38 = vadd.f32 %v352_v22, %v181_v37 }
  0xc7   :  { %v205_v41 = vmax.f32 %v182_v38, 0.0 }
  0xc9   :  { %327 = vmatpush.xpose.msk.msra.mxu1 %vm216_vm2, %v205_v41 }
  0xcd   :  { %328 = vmatpush.xpose.msk.msra.mxu1 %vm216_vm2, %v204_v43 }
  0xd1   :  { %329 = vmatpush.xpose.msk.msra.mxu1 %vm216_vm2, %v203_v45 }
  0xd5   :  { %330 = vmatpush.xpose.msk.msra.mxu1 %vm216_vm2, %v202_v48 }
  0xd9   :  { %331 = vmatpush.xpose.msk.msra.mxu1 %vm216_vm2, %v201_v50 }
  0xdd   :  { %332 = vmatpush.xpose.msk.msra.mxu1 %vm216_vm2, %v200_v53 }
  0xe1   :  { %333 = vmatpush.xpose.msk.msra.mxu1 %vm216_vm2, %v199_v57 }
  0xe5   :  { %334 = vmatpush.xpose.msk.msra.mxu1 %vm216_vm2, %v198_v58 }
  0xe9   :  { %335 = vmatpush.xpose.msk.msra.mxu1 %vm216_vm2, %v197_v61 }
  0xed   :  { %336 = vmatpush.xpose.msk.msra.mxu1 %vm216_vm2, %v196_v63 }
  0xf1   :  { %337 = vmatpush.xpose.msk.msra.mxu1 %vm216_vm2, %v195_v1 }
  0xf5   :  { %338 = vmatpush.xpose.msk.msra.mxu1 %vm216_vm2, %v194_v3 }
  0xf9   :  { %339 = vmatpush.xpose.msk.msra.mxu1 %vm216_vm2, %v193_v4 }
  0xfc   :  { %340 = vmatmul.msk.f32.vlgmr.msra.gmra.mxu1 %vm216_vm2, %v209_v5 }
 0x179   :  { %v285_v7 = vpop.f32.mrf.mxu1 }
 0x17a   :  { %v286_v8 = vadd.f32 %v285_v7, %v214_v6 }
 0x17c   :  { %288 = vst [vmem:[#allocation7] sm:$0x3] %v286_v8 }
 0x17d   :  { %299 = dma.vmem_to_hbm [thread:$0]  %s295_s8, 32, %s297_s11, [#allocation4]  }
 0x17e   :  { %429 = dma.done.wait [#allocation4], 32  }
 0x17f   :  { %430 = vsyncadd [#allocation4], 4294967264 }
 0x180   :  { %304 = vsyncpa [#allocation3], 1 }
 0x181   :  { %305 = vsyncpa [#allocation6], 1 }
 0x182   :  { %306 = vsyncpa [#allocation4], 1 }

</bundles_post_ra>
